<compile_context>
chip_gen: v5e
topology: v5e:2x2
jax: 0.10.0
libtpu: 0.0.40
codegen_flags: <defaults>
</compile_context>

<pallas_src>
import functools
import math

import jax
import jax.numpy as jnp
from jax.experimental import pallas as pl
from jax.experimental.pallas import tpu as pltpu


def _leaky(v, slope=0.01):
    return jnp.where(v >= 0, v, slope * v)


def res_causal_block_kernel(x_ref, w1s_ref, w2s_ref, p_ref, out_ref, *,
                            kernel_size, dilation):
    """Channels-on-sublane / time-on-lane orientation.

    x_ref:   [B, Cin, L]            (module-native layout)
    w1s_ref: [K, 2*Cout, Cin]       per-tap conv1 weights; rows Cout..2*Cout-1 of
                                    tap K-1 hold the fused 1x1 skip-conv weights
    w2s_ref: [K, Cout, Cout]        per-tap conv2 weights
    p_ref:   [Cout, 8]              packed per-channel params
                                    (cols: bskip, g1, bt1, g2, bt2, 0, 0, 0)
    out_ref: [B, Cout, L]
    """
    f32 = jnp.float32
    K = kernel_size
    B, _, L = x_ref.shape
    Cout = out_ref.shape[1]
    eps = 1e-5
    inv_n = 1.0 / float(B * L)

    # packed per-channel params ([Cout, 1] columns; broadcast along lanes)
    p = p_ref[...]
    bskip, g1, bt1 = p[:, 0:1], p[:, 1:2], p[:, 2:3]
    g2, bt2 = p[:, 3:4], p[:, 4:5]

    # per-tap weight slabs (tiny; hoisted out of the batch loops)
    w1k = [w1s_ref[k] for k in range(K)]   # each [2*Cout, Cin]
    w2k = [w2s_ref[k] for k in range(K)]   # each [Cout, Cout]

    def causal_conv(v, w_taps, dil):
        """v: [C, L] -> sum_k w_taps[k] @ shift_fwd(v, (K-1-k)*dil), zero-padded."""
        C = v.shape[0]
        pad = (K - 1) * dil
        vp = jnp.concatenate([jnp.zeros((C, pad), f32), v], axis=1) if pad else v
        acc = None
        for k in range(K):
            # lanes [k*dil, k*dil+L) of vp == v shifted forward in time by (K-1-k)*dil
            tap = vp[:, k * dil:k * dil + L]
            term = jnp.dot(w_taps[k], tap, preferred_element_type=f32)
            acc = term if acc is None else acc + term
        return acc

    # ---- pass 1: conv1 (+ fused 1x1 skip) per batch; BN1 stats in one sweep ----
    # (conv biases b1/b2 are omitted: exactly cancelled by BN mean subtraction)
    h1, skip = [], []
    s1 = jnp.zeros((Cout, 1), f32)
    q1 = jnp.zeros((Cout, 1), f32)
    for b in range(B):
        pre = causal_conv(x_ref[b], w1k, dilation)        # [2*Cout, L]
        hb = pre[:Cout, :]
        h1.append(hb)
        skip.append(pre[Cout:, :])                        # 1x1 skip conv (no bias yet)
        s1 = s1 + jnp.sum(hb, axis=1, keepdims=True)
        q1 = q1 + jnp.sum(hb * hb, axis=1, keepdims=True)
    mean1 = s1 * inv_n
    var1 = q1 * inv_n - mean1 * mean1                     # single-pass E[x^2] - mean^2
    scale1 = g1 * jax.lax.rsqrt(var1 + eps)
    shift1 = bt1 - mean1 * scale1

    # ---- pass 2: conv2 per batch; BN2 stats in one sweep ----
    h2 = []
    s2 = jnp.zeros((Cout, 1), f32)
    q2 = jnp.zeros((Cout, 1), f32)
    for b in range(B):
        a1 = _leaky(h1[b] * scale1 + shift1)              # BN1 + LeakyReLU
        hb = causal_conv(a1, w2k, 2 * dilation)           # [Cout, L]
        h2.append(hb)
        s2 = s2 + jnp.sum(hb, axis=1, keepdims=True)
        q2 = q2 + jnp.sum(hb * hb, axis=1, keepdims=True)
    mean2 = s2 * inv_n
    var2 = q2 * inv_n - mean2 * mean2
    scale2 = g2 * jax.lax.rsqrt(var2 + eps)
    shift2 = (bt2 - mean2 * scale2) + bskip               # fold skip-conv bias in once

    # ---- BN2 apply + residual add + LeakyReLU; lane-dense [Cout, L] stores ----
    for b in range(B):
        out_ref[b] = _leaky(h2[b] * scale2 + shift2 + skip[b])


def res_causal_block_forward(x, params, *, kernel_size, dilation):
    """x: [B, n_in, L] (native PyTorch layout). Returns [B, n_out, L]."""
    w1, b1, w2, b2, wskip, bskip, g1, bt1, g2, bt2 = params
    del b1, b2  # exactly cancelled by training-mode BatchNorm mean subtraction
    B, Cin, L = x.shape
    Cout = w1.shape[0]
    K = kernel_size
    f32 = jnp.float32

    # per-tap weights, channels-on-sublane layout
    w1_t = jnp.transpose(w1, (2, 0, 1)).astype(f32)             # [K, Cout, Cin]
    skip_t = jnp.zeros((K, Cout, Cin), f32).at[K - 1].set(
        wskip[:, :, 0].astype(f32))                             # skip on the s=0 tap
    w1s = jnp.concatenate([w1_t, skip_t], axis=1)               # [K, 2*Cout, Cin]
    w2s = jnp.transpose(w2, (2, 0, 1)).astype(f32)              # [K, Cout, Cout]

    # pack the remaining per-channel vectors into one [Cout, 8] slab (one DMA)
    pvec = jnp.zeros((Cout, 8), f32)
    for col, v in enumerate((bskip, g1, bt1, g2, bt2)):
        pvec = pvec.at[:, col].set(v.astype(f32))

    def fullspec(shape):
        return pl.BlockSpec(shape, lambda i: (0,) * len(shape))

    return pl.pallas_call(
        functools.partial(res_causal_block_kernel,
                          kernel_size=K, dilation=dilation),
        out_shape=jax.ShapeDtypeStruct((B, Cout, L), f32),
        grid=(1,),
        in_specs=[
            fullspec((B, Cin, L)),          # x (native layout, no wrapper transpose)
            fullspec((K, 2 * Cout, Cin)),   # conv1 + fused skip weights
            fullspec((K, Cout, Cout)),      # conv2 weights
            fullspec((Cout, 8)),            # packed per-channel params
        ],
        out_specs=fullspec((B, Cout, L)),
        compiler_params=pltpu.CompilerParams(
            dimension_semantics=("arbitrary",),
            vmem_limit_bytes=48 * 1024 * 1024),
    )(x.astype(f32), w1s, w2s, pvec)


# ------------------------- pure-JAX reference ----------------------------
def _causal_conv1d_ref(x, w, b, dilation):
    """x: [B, Cin, L], w: [Cout, Cin, K]. Mirrors CausalConv1d.forward."""
    K = w.shape[-1]
    pad = dilation * (K - 1)
    y = jax.lax.conv_general_dilated(
        x, w, window_strides=(1,), padding=[(pad, pad)],
        rhs_dilation=(dilation,), dimension_numbers=("NCH", "OIH", "NCH"))
    y = y + b[None, :, None]
    if K == 1:
        return y
    return y[:, :, :-pad]


def _bn_train_ref(x, gamma, beta, eps=1e-5):
    mean = jnp.mean(x, axis=(0, 2), keepdims=True)
    var = jnp.mean(jnp.square(x - mean), axis=(0, 2), keepdims=True)
    return ((x - mean) / jnp.sqrt(var + eps)) * gamma[None, :, None] + beta[None, :, None]


def res_causal_block_ref(x, params, *, kernel_size, dilation):
    w1, b1, w2, b2, wskip, bskip, g1, bt1, g2, bt2 = params
    x_skip = _causal_conv1d_ref(x, wskip, bskip, 1)
    h = _leaky(_bn_train_ref(_causal_conv1d_ref(x, w1, b1, dilation), g1, bt1))
    h = _bn_train_ref(_causal_conv1d_ref(h, w2, b2, 2 * dilation), g2, bt2)
    return _leaky(h + x_skip)


if __name__ == "__main__":
    B, n_in, n_out, L = 2, 4, 8, 16
    K, dilation = 3, 2

    key = jax.random.PRNGKey(0)
    ks = jax.random.split(key, 8)

    x = jax.random.normal(ks[0], (B, n_in, L), dtype=jnp.float32)

    # parameters mirroring the PyTorch module's init (weights ~ N(0, 2/(K*out)),
    # conv biases = 0.1); BN affine randomized slightly to exercise the math
    std_c = math.sqrt(2.0 / (K * n_out))
    std_s = math.sqrt(2.0 / (1 * n_out))
    w1 = std_c * jax.random.normal(ks[1], (n_out, n_in, K), dtype=jnp.float32)
    b1 = jnp.full((n_out,), 0.1, dtype=jnp.float32)
    w2 = std_c * jax.random.normal(ks[2], (n_out, n_out, K), dtype=jnp.float32)
    b2 = jnp.full((n_out,), 0.1, dtype=jnp.float32)
    wskip = std_s * jax.random.normal(ks[3], (n_out, n_in, 1), dtype=jnp.float32)
    bskip = jnp.full((n_out,), 0.1, dtype=jnp.float32)
    g1 = 1.0 + 0.1 * jax.random.normal(ks[4], (n_out,), dtype=jnp.float32)
    bt1 = 0.1 * jax.random.normal(ks[5], (n_out,), dtype=jnp.float32)
    g2 = 1.0 + 0.1 * jax.random.normal(ks[6], (n_out,), dtype=jnp.float32)
    bt2 = 0.1 * jax.random.normal(ks[7], (n_out,), dtype=jnp.float32)
    params = (w1, b1, w2, b2, wskip, bskip, g1, bt1, g2, bt2)

    out = jax.block_until_ready(
        res_causal_block_forward(x, params, kernel_size=K, dilation=dilation))
    ref = jax.block_until_ready(
        res_causal_block_ref(x, params, kernel_size=K, dilation=dilation))

    assert out.shape == (B, n_out, L), out.shape
    max_err = float(jnp.max(jnp.abs(out - ref)))
    assert jnp.allclose(out, ref, atol=2e-4, rtol=2e-4), max_err

    print("KERNEL_OK")
</pallas_src>

<mosaic_0001>
module attributes {stable_mosaic.version = 11 : i64} {
  func.func @res_causal_block_kernel(%arg0: i32, %arg1: memref<2x4x16xf32, #tpu.memory_space<vmem>>, %arg2: memref<3x16x4xf32, #tpu.memory_space<vmem>>, %arg3: memref<3x8x8xf32, #tpu.memory_space<vmem>>, %arg4: memref<8x8xf32, #tpu.memory_space<vmem>>, %arg5: memref<2x8x16xf32, #tpu.memory_space<vmem>>) attributes {dimension_semantics = [#tpu.dimension_semantics<arbitrary>], iteration_bounds = array<i64: 1>, scalar_prefetch = 0 : i64, scratch_operands = 0 : i64, tpu.core_type = #tpu.core_type<tc>, window_params = [{pipeline_mode = #tpu.pipeline_mode<synchronous>, transform_indices = @transform_0, window_bounds = array<i64: 2, 4, 16>}, {pipeline_mode = #tpu.pipeline_mode<synchronous>, transform_indices = @transform_1, window_bounds = array<i64: 3, 16, 4>}, {pipeline_mode = #tpu.pipeline_mode<synchronous>, transform_indices = @transform_2, window_bounds = array<i64: 3, 8, 8>}, {pipeline_mode = #tpu.pipeline_mode<synchronous>, transform_indices = @transform_3, window_bounds = array<i64: 8, 8>}, {pipeline_mode = #tpu.pipeline_mode<synchronous>, transform_indices = @transform_4, window_bounds = array<i64: 2, 8, 16>}]} {
    %c0 = arith.constant 0 : index
    %c0_0 = arith.constant 0 : index
    %0 = vector.load %arg4[%c0, %c0_0] : memref<8x8xf32, #tpu.memory_space<vmem>>, vector<8x8xf32>
    %1 = vector.extract_strided_slice %0 {offsets = [0, 0], sizes = [8, 1], strides = [1, 1]} : vector<8x8xf32> to vector<8x1xf32>
    %2 = vector.extract_strided_slice %0 {offsets = [0, 1], sizes = [8, 1], strides = [1, 1]} : vector<8x8xf32> to vector<8x1xf32>
    %3 = vector.extract_strided_slice %0 {offsets = [0, 2], sizes = [8, 1], strides = [1, 1]} : vector<8x8xf32> to vector<8x1xf32>
    %4 = vector.extract_strided_slice %0 {offsets = [0, 3], sizes = [8, 1], strides = [1, 1]} : vector<8x8xf32> to vector<8x1xf32>
    %5 = vector.extract_strided_slice %0 {offsets = [0, 4], sizes = [8, 1], strides = [1, 1]} : vector<8x8xf32> to vector<8x1xf32>
    %c0_1 = arith.constant 0 : index
    %c0_2 = arith.constant 0 : index
    %c0_3 = arith.constant 0 : index
    %6 = vector.load %arg2[%c0_1, %c0_2, %c0_3] : memref<3x16x4xf32, #tpu.memory_space<vmem>>, vector<1x16x4xf32>
    %7 = vector.shape_cast %6 : vector<1x16x4xf32> to vector<16x4xf32>
    %c1 = arith.constant 1 : index
    %c0_4 = arith.constant 0 : index
    %c0_5 = arith.constant 0 : index
    %8 = vector.load %arg2[%c1, %c0_4, %c0_5] : memref<3x16x4xf32, #tpu.memory_space<vmem>>, vector<1x16x4xf32>
    %9 = vector.shape_cast %8 : vector<1x16x4xf32> to vector<16x4xf32>
    %c2 = arith.constant 2 : index
    %c0_6 = arith.constant 0 : index
    %c0_7 = arith.constant 0 : index
    %10 = vector.load %arg2[%c2, %c0_6, %c0_7] : memref<3x16x4xf32, #tpu.memory_space<vmem>>, vector<1x16x4xf32>
    %11 = vector.shape_cast %10 : vector<1x16x4xf32> to vector<16x4xf32>
    %c0_8 = arith.constant 0 : index
    %c0_9 = arith.constant 0 : index
    %c0_10 = arith.constant 0 : index
    %12 = vector.load %arg3[%c0_8, %c0_9, %c0_10] : memref<3x8x8xf32, #tpu.memory_space<vmem>>, vector<1x8x8xf32>
    %13 = vector.shape_cast %12 : vector<1x8x8xf32> to vector<8x8xf32>
    %c1_11 = arith.constant 1 : index
    %c0_12 = arith.constant 0 : index
    %c0_13 = arith.constant 0 : index
    %14 = vector.load %arg3[%c1_11, %c0_12, %c0_13] : memref<3x8x8xf32, #tpu.memory_space<vmem>>, vector<1x8x8xf32>
    %15 = vector.shape_cast %14 : vector<1x8x8xf32> to vector<8x8xf32>
    %c2_14 = arith.constant 2 : index
    %c0_15 = arith.constant 0 : index
    %c0_16 = arith.constant 0 : index
    %16 = vector.load %arg3[%c2_14, %c0_15, %c0_16] : memref<3x8x8xf32, #tpu.memory_space<vmem>>, vector<1x8x8xf32>
    %17 = vector.shape_cast %16 : vector<1x8x8xf32> to vector<8x8xf32>
    %cst = arith.constant 0.000000e+00 : f32
    %18 = vector.broadcast %cst : f32 to vector<8x1xf32>
    %cst_17 = arith.constant 0.000000e+00 : f32
    %19 = vector.broadcast %cst_17 : f32 to vector<8x1xf32>
    %c0_18 = arith.constant 0 : index
    %c0_19 = arith.constant 0 : index
    %c0_20 = arith.constant 0 : index
    %20 = vector.load %arg1[%c0_18, %c0_19, %c0_20] : memref<2x4x16xf32, #tpu.memory_space<vmem>>, vector<1x4x16xf32>
    %21 = vector.shape_cast %20 : vector<1x4x16xf32> to vector<4x16xf32>
    %cst_21 = arith.constant 0.000000e+00 : f32
    %22 = vector.broadcast %cst_21 : f32 to vector<4x4xf32>
    %23 = tpu.concatenate %22, %21 in 1 : vector<4x4xf32>, vector<4x16xf32> -> vector<4x20xf32>
    %24 = vector.extract_strided_slice %23 {offsets = [0, 0], sizes = [4, 16], strides = [1, 1]} : vector<4x20xf32> to vector<4x16xf32>
    %cst_22 = arith.constant dense<0.000000e+00> : vector<16x16xf32>
    %25 = tpu.matmul %7, %24, %cst_22 {dimension_numbers = #tpu.dot_dimension_numbers<[1], [0], [0], [1], [0, 0, 1, 1], [], []>} : vector<16x4xf32>, vector<4x16xf32>, vector<16x16xf32> -> vector<16x16xf32>
    %26 = vector.extract_strided_slice %23 {offsets = [0, 2], sizes = [4, 16], strides = [1, 1]} : vector<4x20xf32> to vector<4x16xf32>
    %cst_23 = arith.constant dense<0.000000e+00> : vector<16x16xf32>
    %27 = tpu.matmul %9, %26, %cst_23 {dimension_numbers = #tpu.dot_dimension_numbers<[1], [0], [0], [1], [0, 0, 1, 1], [], []>} : vector<16x4xf32>, vector<4x16xf32>, vector<16x16xf32> -> vector<16x16xf32>
    %28 = arith.addf %25, %27 : vector<16x16xf32>
    %29 = vector.extract_strided_slice %23 {offsets = [0, 4], sizes = [4, 16], strides = [1, 1]} : vector<4x20xf32> to vector<4x16xf32>
    %cst_24 = arith.constant dense<0.000000e+00> : vector<16x16xf32>
    %30 = tpu.matmul %11, %29, %cst_24 {dimension_numbers = #tpu.dot_dimension_numbers<[1], [0], [0], [1], [0, 0, 1, 1], [], []>} : vector<16x4xf32>, vector<4x16xf32>, vector<16x16xf32> -> vector<16x16xf32>
    %31 = arith.addf %28, %30 : vector<16x16xf32>
    %32 = vector.extract_strided_slice %31 {offsets = [0, 0], sizes = [8, 16], strides = [1, 1]} : vector<16x16xf32> to vector<8x16xf32>
    %33 = vector.extract_strided_slice %31 {offsets = [8, 0], sizes = [8, 16], strides = [1, 1]} : vector<16x16xf32> to vector<8x16xf32>
    %cst_25 = arith.constant dense<0.000000e+00> : vector<8xf32>
    %34 = vector.multi_reduction <add>, %32, %cst_25 [1] : vector<8x16xf32> to vector<8xf32>
    %35 = vector.shape_cast %34 : vector<8xf32> to vector<8x1xf32>
    %36 = arith.addf %18, %35 : vector<8x1xf32>
    %37 = arith.mulf %32, %32 : vector<8x16xf32>
    %cst_26 = arith.constant dense<0.000000e+00> : vector<8xf32>
    %38 = vector.multi_reduction <add>, %37, %cst_26 [1] : vector<8x16xf32> to vector<8xf32>
    %39 = vector.shape_cast %38 : vector<8xf32> to vector<8x1xf32>
    %40 = arith.addf %19, %39 : vector<8x1xf32>
    %c1_27 = arith.constant 1 : index
    %c0_28 = arith.constant 0 : index
    %c0_29 = arith.constant 0 : index
    %41 = vector.load %arg1[%c1_27, %c0_28, %c0_29] : memref<2x4x16xf32, #tpu.memory_space<vmem>>, vector<1x4x16xf32>
    %42 = vector.shape_cast %41 : vector<1x4x16xf32> to vector<4x16xf32>
    %cst_30 = arith.constant 0.000000e+00 : f32
    %43 = vector.broadcast %cst_30 : f32 to vector<4x4xf32>
    %44 = tpu.concatenate %43, %42 in 1 : vector<4x4xf32>, vector<4x16xf32> -> vector<4x20xf32>
    %45 = vector.extract_strided_slice %44 {offsets = [0, 0], sizes = [4, 16], strides = [1, 1]} : vector<4x20xf32> to vector<4x16xf32>
    %cst_31 = arith.constant dense<0.000000e+00> : vector<16x16xf32>
    %46 = tpu.matmul %7, %45, %cst_31 {dimension_numbers = #tpu.dot_dimension_numbers<[1], [0], [0], [1], [0, 0, 1, 1], [], []>} : vector<16x4xf32>, vector<4x16xf32>, vector<16x16xf32> -> vector<16x16xf32>
    %47 = vector.extract_strided_slice %44 {offsets = [0, 2], sizes = [4, 16], strides = [1, 1]} : vector<4x20xf32> to vector<4x16xf32>
    %cst_32 = arith.constant dense<0.000000e+00> : vector<16x16xf32>
    %48 = tpu.matmul %9, %47, %cst_32 {dimension_numbers = #tpu.dot_dimension_numbers<[1], [0], [0], [1], [0, 0, 1, 1], [], []>} : vector<16x4xf32>, vector<4x16xf32>, vector<16x16xf32> -> vector<16x16xf32>
    %49 = arith.addf %46, %48 : vector<16x16xf32>
    %50 = vector.extract_strided_slice %44 {offsets = [0, 4], sizes = [4, 16], strides = [1, 1]} : vector<4x20xf32> to vector<4x16xf32>
    %cst_33 = arith.constant dense<0.000000e+00> : vector<16x16xf32>
    %51 = tpu.matmul %11, %50, %cst_33 {dimension_numbers = #tpu.dot_dimension_numbers<[1], [0], [0], [1], [0, 0, 1, 1], [], []>} : vector<16x4xf32>, vector<4x16xf32>, vector<16x16xf32> -> vector<16x16xf32>
    %52 = arith.addf %49, %51 : vector<16x16xf32>
    %53 = vector.extract_strided_slice %52 {offsets = [0, 0], sizes = [8, 16], strides = [1, 1]} : vector<16x16xf32> to vector<8x16xf32>
    %54 = vector.extract_strided_slice %52 {offsets = [8, 0], sizes = [8, 16], strides = [1, 1]} : vector<16x16xf32> to vector<8x16xf32>
    %cst_34 = arith.constant dense<0.000000e+00> : vector<8xf32>
    %55 = vector.multi_reduction <add>, %53, %cst_34 [1] : vector<8x16xf32> to vector<8xf32>
    %56 = vector.shape_cast %55 : vector<8xf32> to vector<8x1xf32>
    %57 = arith.addf %36, %56 : vector<8x1xf32>
    %58 = arith.mulf %53, %53 : vector<8x16xf32>
    %cst_35 = arith.constant dense<0.000000e+00> : vector<8xf32>
    %59 = vector.multi_reduction <add>, %58, %cst_35 [1] : vector<8x16xf32> to vector<8xf32>
    %60 = vector.shape_cast %59 : vector<8xf32> to vector<8x1xf32>
    %61 = arith.addf %40, %60 : vector<8x1xf32>
    %cst_36 = arith.constant 3.125000e-02 : f32
    %62 = vector.broadcast %cst_36 : f32 to vector<8x1xf32>
    %63 = arith.mulf %57, %62 : vector<8x1xf32>
    %cst_37 = arith.constant 3.125000e-02 : f32
    %64 = vector.broadcast %cst_37 : f32 to vector<8x1xf32>
    %65 = arith.mulf %61, %64 : vector<8x1xf32>
    %66 = arith.mulf %63, %63 : vector<8x1xf32>
    %67 = arith.subf %65, %66 : vector<8x1xf32>
    %cst_38 = arith.constant 9.99999974E-6 : f32
    %68 = vector.broadcast %cst_38 : f32 to vector<8x1xf32>
    %69 = arith.addf %67, %68 : vector<8x1xf32>
    %70 = math.rsqrt %69 : vector<8x1xf32>
    %71 = arith.mulf %2, %70 : vector<8x1xf32>
    %72 = arith.mulf %63, %71 : vector<8x1xf32>
    %73 = arith.subf %3, %72 : vector<8x1xf32>
    %cst_39 = arith.constant 0.000000e+00 : f32
    %74 = vector.broadcast %cst_39 : f32 to vector<8x1xf32>
    %cst_40 = arith.constant 0.000000e+00 : f32
    %75 = vector.broadcast %cst_40 : f32 to vector<8x1xf32>
    %76 = vector.broadcast %71 : vector<8x1xf32> to vector<8x16xf32>
    %77 = arith.mulf %32, %76 : vector<8x16xf32>
    %78 = vector.broadcast %73 : vector<8x1xf32> to vector<8x16xf32>
    %79 = arith.addf %77, %78 : vector<8x16xf32>
    %cst_41 = arith.constant 0.000000e+00 : f32
    %80 = vector.broadcast %cst_41 : f32 to vector<8x16xf32>
    %81 = arith.cmpf oge, %79, %80 : vector<8x16xf32>
    %cst_42 = arith.constant 0.00999999977 : f32
    %82 = vector.broadcast %cst_42 : f32 to vector<8x16xf32>
    %83 = arith.mulf %82, %79 : vector<8x16xf32>
    %84 = arith.select %81, %79, %83 : vector<8x16xi1>, vector<8x16xf32>
    %cst_43 = arith.constant 0.000000e+00 : f32
    %85 = vector.broadcast %cst_43 : f32 to vector<8x8xf32>
    %86 = tpu.concatenate %85, %84 in 1 : vector<8x8xf32>, vector<8x16xf32> -> vector<8x24xf32>
    %87 = vector.extract_strided_slice %86 {offsets = [0, 0], sizes = [8, 16], strides = [1, 1]} : vector<8x24xf32> to vector<8x16xf32>
    %cst_44 = arith.constant dense<0.000000e+00> : vector<8x16xf32>
    %88 = tpu.matmul %13, %87, %cst_44 {dimension_numbers = #tpu.dot_dimension_numbers<[1], [0], [0], [1], [0, 0, 1, 1], [], []>} : vector<8x8xf32>, vector<8x16xf32>, vector<8x16xf32> -> vector<8x16xf32>
    %89 = vector.extract_strided_slice %86 {offsets = [0, 4], sizes = [8, 16], strides = [1, 1]} : vector<8x24xf32> to vector<8x16xf32>
    %cst_45 = arith.constant dense<0.000000e+00> : vector<8x16xf32>
    %90 = tpu.matmul %15, %89, %cst_45 {dimension_numbers = #tpu.dot_dimension_numbers<[1], [0], [0], [1], [0, 0, 1, 1], [], []>} : vector<8x8xf32>, vector<8x16xf32>, vector<8x16xf32> -> vector<8x16xf32>
    %91 = arith.addf %88, %90 : vector<8x16xf32>
    %92 = vector.extract_strided_slice %86 {offsets = [0, 8], sizes = [8, 16], strides = [1, 1]} : vector<8x24xf32> to vector<8x16xf32>
    %cst_46 = arith.constant dense<0.000000e+00> : vector<8x16xf32>
    %93 = tpu.matmul %17, %92, %cst_46 {dimension_numbers = #tpu.dot_dimension_numbers<[1], [0], [0], [1], [0, 0, 1, 1], [], []>} : vector<8x8xf32>, vector<8x16xf32>, vector<8x16xf32> -> vector<8x16xf32>
    %94 = arith.addf %91, %93 : vector<8x16xf32>
    %cst_47 = arith.constant dense<0.000000e+00> : vector<8xf32>
    %95 = vector.multi_reduction <add>, %94, %cst_47 [1] : vector<8x16xf32> to vector<8xf32>
    %96 = vector.shape_cast %95 : vector<8xf32> to vector<8x1xf32>
    %97 = arith.addf %74, %96 : vector<8x1xf32>
    %98 = arith.mulf %94, %94 : vector<8x16xf32>
    %cst_48 = arith.constant dense<0.000000e+00> : vector<8xf32>
    %99 = vector.multi_reduction <add>, %98, %cst_48 [1] : vector<8x16xf32> to vector<8xf32>
    %100 = vector.shape_cast %99 : vector<8xf32> to vector<8x1xf32>
    %101 = arith.addf %75, %100 : vector<8x1xf32>
    %102 = vector.broadcast %71 : vector<8x1xf32> to vector<8x16xf32>
    %103 = arith.mulf %53, %102 : vector<8x16xf32>
    %104 = vector.broadcast %73 : vector<8x1xf32> to vector<8x16xf32>
    %105 = arith.addf %103, %104 : vector<8x16xf32>
    %cst_49 = arith.constant 0.000000e+00 : f32
    %106 = vector.broadcast %cst_49 : f32 to vector<8x16xf32>
    %107 = arith.cmpf oge, %105, %106 : vector<8x16xf32>
    %cst_50 = arith.constant 0.00999999977 : f32
    %108 = vector.broadcast %cst_50 : f32 to vector<8x16xf32>
    %109 = arith.mulf %108, %105 : vector<8x16xf32>
    %110 = arith.select %107, %105, %109 : vector<8x16xi1>, vector<8x16xf32>
    %cst_51 = arith.constant 0.000000e+00 : f32
    %111 = vector.broadcast %cst_51 : f32 to vector<8x8xf32>
    %112 = tpu.concatenate %111, %110 in 1 : vector<8x8xf32>, vector<8x16xf32> -> vector<8x24xf32>
    %113 = vector.extract_strided_slice %112 {offsets = [0, 0], sizes = [8, 16], strides = [1, 1]} : vector<8x24xf32> to vector<8x16xf32>
    %cst_52 = arith.constant dense<0.000000e+00> : vector<8x16xf32>
    %114 = tpu.matmul %13, %113, %cst_52 {dimension_numbers = #tpu.dot_dimension_numbers<[1], [0], [0], [1], [0, 0, 1, 1], [], []>} : vector<8x8xf32>, vector<8x16xf32>, vector<8x16xf32> -> vector<8x16xf32>
    %115 = vector.extract_strided_slice %112 {offsets = [0, 4], sizes = [8, 16], strides = [1, 1]} : vector<8x24xf32> to vector<8x16xf32>
    %cst_53 = arith.constant dense<0.000000e+00> : vector<8x16xf32>
    %116 = tpu.matmul %15, %115, %cst_53 {dimension_numbers = #tpu.dot_dimension_numbers<[1], [0], [0], [1], [0, 0, 1, 1], [], []>} : vector<8x8xf32>, vector<8x16xf32>, vector<8x16xf32> -> vector<8x16xf32>
    %117 = arith.addf %114, %116 : vector<8x16xf32>
    %118 = vector.extract_strided_slice %112 {offsets = [0, 8], sizes = [8, 16], strides = [1, 1]} : vector<8x24xf32> to vector<8x16xf32>
    %cst_54 = arith.constant dense<0.000000e+00> : vector<8x16xf32>
    %119 = tpu.matmul %17, %118, %cst_54 {dimension_numbers = #tpu.dot_dimension_numbers<[1], [0], [0], [1], [0, 0, 1, 1], [], []>} : vector<8x8xf32>, vector<8x16xf32>, vector<8x16xf32> -> vector<8x16xf32>
    %120 = arith.addf %117, %119 : vector<8x16xf32>
    %cst_55 = arith.constant dense<0.000000e+00> : vector<8xf32>
    %121 = vector.multi_reduction <add>, %120, %cst_55 [1] : vector<8x16xf32> to vector<8xf32>
    %122 = vector.shape_cast %121 : vector<8xf32> to vector<8x1xf32>
    %123 = arith.addf %97, %122 : vector<8x1xf32>
    %124 = arith.mulf %120, %120 : vector<8x16xf32>
    %cst_56 = arith.constant dense<0.000000e+00> : vector<8xf32>
    %125 = vector.multi_reduction <add>, %124, %cst_56 [1] : vector<8x16xf32> to vector<8xf32>
    %126 = vector.shape_cast %125 : vector<8xf32> to vector<8x1xf32>
    %127 = arith.addf %101, %126 : vector<8x1xf32>
    %cst_57 = arith.constant 3.125000e-02 : f32
    %128 = vector.broadcast %cst_57 : f32 to vector<8x1xf32>
    %129 = arith.mulf %123, %128 : vector<8x1xf32>
    %cst_58 = arith.constant 3.125000e-02 : f32
    %130 = vector.broadcast %cst_58 : f32 to vector<8x1xf32>
    %131 = arith.mulf %127, %130 : vector<8x1xf32>
    %132 = arith.mulf %129, %129 : vector<8x1xf32>
    %133 = arith.subf %131, %132 : vector<8x1xf32>
    %cst_59 = arith.constant 9.99999974E-6 : f32
    %134 = vector.broadcast %cst_59 : f32 to vector<8x1xf32>
    %135 = arith.addf %133, %134 : vector<8x1xf32>
    %136 = math.rsqrt %135 : vector<8x1xf32>
    %137 = arith.mulf %4, %136 : vector<8x1xf32>
    %138 = arith.mulf %129, %137 : vector<8x1xf32>
    %139 = arith.subf %5, %138 : vector<8x1xf32>
    %140 = arith.addf %139, %1 : vector<8x1xf32>
    %141 = vector.broadcast %137 : vector<8x1xf32> to vector<8x16xf32>
    %142 = arith.mulf %94, %141 : vector<8x16xf32>
    %143 = vector.broadcast %140 : vector<8x1xf32> to vector<8x16xf32>
    %144 = arith.addf %142, %143 : vector<8x16xf32>
    %145 = arith.addf %144, %33 : vector<8x16xf32>
    %cst_60 = arith.constant 0.000000e+00 : f32
    %146 = vector.broadcast %cst_60 : f32 to vector<8x16xf32>
    %147 = arith.cmpf oge, %145, %146 : vector<8x16xf32>
    %cst_61 = arith.constant 0.00999999977 : f32
    %148 = vector.broadcast %cst_61 : f32 to vector<8x16xf32>
    %149 = arith.mulf %148, %145 : vector<8x16xf32>
    %150 = arith.select %147, %145, %149 : vector<8x16xi1>, vector<8x16xf32>
    %c0_62 = arith.constant 0 : index
    %c0_63 = arith.constant 0 : index
    %c0_64 = arith.constant 0 : index
    %151 = vector.load %arg5[%c0_62, %c0_63, %c0_64] : memref<2x8x16xf32, #tpu.memory_space<vmem>>, vector<1x8x16xf32>
    %152 = vector.shape_cast %151 : vector<1x8x16xf32> to vector<8x16xf32>
    %153 = vector.shape_cast %150 : vector<8x16xf32> to vector<1x8x16xf32>
    tpu.vector_store %arg5[%c0_62, %c0_63, %c0_64], %153 {strides = array<i32>} : memref<2x8x16xf32, #tpu.memory_space<vmem>>, vector<1x8x16xf32>,
    %154 = vector.broadcast %137 : vector<8x1xf32> to vector<8x16xf32>
    %155 = arith.mulf %120, %154 : vector<8x16xf32>
    %156 = vector.broadcast %140 : vector<8x1xf32> to vector<8x16xf32>
    %157 = arith.addf %155, %156 : vector<8x16xf32>
    %158 = arith.addf %157, %54 : vector<8x16xf32>
    %cst_65 = arith.constant 0.000000e+00 : f32
    %159 = vector.broadcast %cst_65 : f32 to vector<8x16xf32>
    %160 = arith.cmpf oge, %158, %159 : vector<8x16xf32>
    %cst_66 = arith.constant 0.00999999977 : f32
    %161 = vector.broadcast %cst_66 : f32 to vector<8x16xf32>
    %162 = arith.mulf %161, %158 : vector<8x16xf32>
    %163 = arith.select %160, %158, %162 : vector<8x16xi1>, vector<8x16xf32>
    %c1_67 = arith.constant 1 : index
    %c0_68 = arith.constant 0 : index
    %c0_69 = arith.constant 0 : index
    %164 = vector.load %arg5[%c1_67, %c0_68, %c0_69] : memref<2x8x16xf32, #tpu.memory_space<vmem>>, vector<1x8x16xf32>
    %165 = vector.shape_cast %164 : vector<1x8x16xf32> to vector<8x16xf32>
    %166 = vector.shape_cast %163 : vector<8x16xf32> to vector<1x8x16xf32>
    tpu.vector_store %arg5[%c1_67, %c0_68, %c0_69], %166 {strides = array<i32>} : memref<2x8x16xf32, #tpu.memory_space<vmem>>, vector<1x8x16xf32>,
    return
  }
  func.func @transform_0(%arg0: i32) -> (i32, i32, i32) {
    %c0_i32 = arith.constant 0 : i32
    %c0_i32_0 = arith.constant 0 : i32
    %c0_i32_1 = arith.constant 0 : i32
    %c0_i32_2 = arith.constant 0 : i32
    return %c0_i32, %c0_i32_0, %c0_i32_1 : i32, i32, i32
  }
  func.func @transform_1(%arg0: i32) -> (i32, i32, i32) {
    %c0_i32 = arith.constant 0 : i32
    %c0_i32_0 = arith.constant 0 : i32
    %c0_i32_1 = arith.constant 0 : i32
    %c0_i32_2 = arith.constant 0 : i32
    return %c0_i32, %c0_i32_0, %c0_i32_1 : i32, i32, i32
  }
  func.func @transform_2(%arg0: i32) -> (i32, i32, i32) {
    %c0_i32 = arith.constant 0 : i32
    %c0_i32_0 = arith.constant 0 : i32
    %c0_i32_1 = arith.constant 0 : i32
    %c0_i32_2 = arith.constant 0 : i32
    return %c0_i32, %c0_i32_0, %c0_i32_1 : i32, i32, i32
  }
  func.func @transform_3(%arg0: i32) -> (i32, i32) {
    %c0_i32 = arith.constant 0 : i32
    %c0_i32_0 = arith.constant 0 : i32
    %c0_i32_1 = arith.constant 0 : i32
    return %c0_i32, %c0_i32_0 : i32, i32
  }
  func.func @transform_4(%arg0: i32) -> (i32, i32, i32) {
    %c0_i32 = arith.constant 0 : i32
    %c0_i32_0 = arith.constant 0 : i32
    %c0_i32_1 = arith.constant 0 : i32
    %c0_i32_2 = arith.constant 0 : i32
    return %c0_i32, %c0_i32_0, %c0_i32_1 : i32, i32, i32
  }
}

</mosaic_0001>

<bundles_post_ra>
// kernel: tpu_custom_call.1
= control target key start
LH: loop header
LB: loop body
LE: loop exit
PB: predicated region body
PF: predicated region fallthrough
CT: control target
= control target key end

     0   :  { %s615_s17 = smov 4   ;;  %s755_s0 = inlined_call_operand.vmem [shape: f32[2,4,16], index: 0, kind: input, shape index: {}]   ;;  %s756_s1 = inlined_call_operand.vmem [shape: f32[3,16,4], index: 1, kind: input, shape index: {}]   ;;  %s757_s2 = inlined_call_operand.vmem [shape: f32[3,8,8], index: 2, kind: input, shape index: {}]   ;;  %s758_s3 = inlined_call_operand.vmem [shape: f32[8,8], index: 3, kind: input, shape index: {}]   ;;  %s759_s4 = inlined_call_operand.hbm [shape: f32[2,8,16], index: 4, kind: output, shape index: {}]  }
   0x1   :  { %v32_v0 = vld [vmem:[%s755_s0] sm:$0xf] }
   0x2   :  { %34 = vrot.lane.b32.xlu0 %v32_v0, %s615_s17 }
   0x3   :  { %9 = vsyncpa [#allocation3], 0  ;;  %v549_v1 = vld [vmem:[%s755_s0 + $0x4] sm:$0xf]  ;;  %vm37_vm0 = vcmask 31744   ;;  %vm48_vm1 = vcmask 1043456  }
   0x4   :  { %s616_s20 = smov 124   ;;  %s617_s21 = smov 126   ;;  %v19_v6 = vld [vmem:[%s756_s1] sm:$0xff]  ;;  %v20_v9 = vld [vmem:[%s756_s1 + $0x8] sm:$0xff]  ;;  %v534_v12 = vld [vmem:[%s756_s1 + $0x10] sm:$0xff]  ;;  %vm140_vm2 = vcmask 130048  }
   0x5   :  { %v536_v7 = vld [vmem:[%s756_s1 + $0x20] sm:$0xff]  ;;  %v537_v10 = vld [vmem:[%s756_s1 + $0x28] sm:$0xff]  ;;  %v535_v14 = vld [vmem:[%s756_s1 + $0x18] sm:$0xff]  ;;  %v618_v35 = vmov 1   ;;  %s619_s8 = smov 1   ;;  %v620_v57 = vmov 2  }
   0x6   :  { %581 = vset.pattern.permute.xlu1 %v618_v35  ;;  %v709_v52 = vld [vmem:[%s758_s3] sm:$0xff]  ;;  %582 = vset.pattern.permute.xlu2 %v620_v57  ;;  %s621_s3 = smov 8   ;;  %vm289_vm8 = vcmask 64512   ;;  %s622_s9 = smov 120  }
   0x7   :  { %vm560_vm9 = vmneg %vm289_vm8  ;;  %s522_s19 = sshll.u32 %s759_s4, 4  ;;  %s523_s19 = int_to_ptr.hbm [resolvable:$true] %s522_s19 }
   0xa   :  { %153 = vrot.lane.b32.xlu0 %v549_v1, %s615_s17 }
  0x74   :  { %v35_v2 = vpop.permute.xlu0 %34 }
  0x75   :  { %v38_v3 = vsel %vm37_vm0, 0.0, %v35_v2 }
  0x76   :  { %105 = vrot.lane.b32.xlu2 %v38_v3, %s616_s20  ;;  %40 = vrot.lane.b32.xlu1 %v38_v3, %s617_s21 }
  0x77   :  { %543 = vmatpush.msk.msra.mxu1 %vm48_vm1, %v38_v3 }
  0x78   :  { %544 = vmatmul.msk.f32.vlgmr.msra.gmra.mxu1 %vm37_vm0, %v19_v6 }
  0x7c   :  { %v154_v4 = vpop.permute.xlu0 %153 }
  0x7d   :  { %v156_v5 = vsel %vm37_vm0, 0.0, %v154_v4 }
  0x7e   :  { %210 = vrot.lane.b32.xlu2 %v156_v5, %s616_s20  ;;  %158 = vrot.lane.b32.xlu1 %v156_v5, %s617_s21 }
  0x80   :  { %545 = vmatmul.msk.f32.gmra.mxu1 %vm37_vm0, %v20_v9 }
  0xd0   :  { %v106_v8 = vpop.permute.xlu2 %105 }
  0xd1   :  { %546 = vmatpush.msk.msra.mxu2 %vm48_vm1, %v106_v8 }
  0xd2   :  { %547 = vmatmul.msk.f32.vlgmr.msra.gmra.mxu2 %vm37_vm0, %v536_v7 }
  0xd8   :  { %v211_v11 = vpop.permute.xlu2 %210 }
  0xd9   :  { %556 = vmatpush.msk.msrb.mxu1 %vm48_vm1, %v211_v11 }
  0xda   :  { %548 = vmatmul.msk.f32.gmra.mxu2 %vm37_vm0, %v537_v10  ;;  %557 = vmatmul.msk.f32.vlgmr.msrb.gmra.mxu1 %vm37_vm0, %v536_v7 }
  0xe2   :  { %558 = vmatmul.msk.f32.gmra.mxu1 %vm37_vm0, %v537_v10  ;;  %v27_v10 = vld [vmem:[%s757_s2] sm:$0xff] }
  0xe8   :  { %v41_v13 = vpop.permute.xlu1 %40 }
  0xe9   :  { %540 = vmatpush.msk.msra.mxu0 %vm48_vm1, %v41_v13 }
  0xea   :  { %541 = vmatmul.msk.f32.vlgmr.msra.gmra.mxu0 %vm37_vm0, %v534_v12 }
  0xeb   :  { %553 = vmatpush.msk.msrb.mxu0 %vm48_vm1, %v156_v5 }
  0xf0   :  { %v159_v15 = vpop.permute.xlu1 %158 }
  0xf1   :  { %550 = vmatpush.msk.msra.mxu3 %vm48_vm1, %v159_v15  ;;  %v539_v15 = vld [vmem:[%s757_s2 + $0x10] sm:$0xff] }
  0xf2   :  { %542 = vmatmul.msk.f32.gmra.mxu0 %vm37_vm0, %v535_v14  ;;  %551 = vmatmul.msk.f32.vlgmr.msra.gmra.mxu3 %vm37_vm0, %v534_v12  ;;  %v538_v12 = vld [vmem:[%s757_s2 + $0x8] sm:$0xff]  ;;  %s625_s2 = smov [#allocation2]  }
  0xf3   :  { %s520_s16 = sshll.u32 %s625_s2, 4  ;;  %s521_s16 = int_to_ptr.vmem [resolvable:$true] %s520_s16 }
  0xf5   :  { %v99_v16 = vpop.f32.mrf.mxu1 }
  0xfa   :  { %554 = vmatmul.msk.f32.vlgmr.msrb.gmra.mxu0 %vm37_vm0, %v19_v6  ;;  %552 = vmatmul.msk.f32.gmra.mxu3 %vm37_vm0, %v535_v14 }
  0xfd   :  { %v102_v23 = vpop.f32.mrf.mxu1 }
 0x102   :  { %555 = vmatmul.msk.f32.gmra.mxu0 %vm37_vm0, %v20_v9 }
 0x155   :  { %v132_v18 = vpop.f32.mrf.mxu2 }
 0x157   :  { %v231_v29 = vpop.f32.mrf.mxu1 }
 0x167   :  { %v68_v17 = vpop.f32.mrf.mxu0 }
 0x168   :  { %v100_v19 = vadd.f32 %v99_v16, %v68_v17 }
 0x16a   :  { %v138_v20 = vadd.f32 %v132_v18, %v100_v19 }
 0x16c   :  { %v141_v21 = vsel %vm140_vm2, %v138_v20, 0.0  ;;  %v145_v22 = vmul.f32 %v138_v20, %v138_v20 }
 0x16d   :  { %142 = vadd.xlane.f32.xlu0 %v141_v21 }
 0x16e   :  { %v146_v24 = vsel %vm140_vm2, %v145_v22, 0.0 }
 0x16f   :  { %v71_v25 = vpop.f32.mrf.mxu0  ;;  %147 = vadd.xlane.f32.xlu2 %v146_v24 }
 0x170   :  { %v702_v26 = vadd.f32 %v102_v23, %v71_v25  ;;  %v135_v23 = vpop.f32.mrf.mxu2 }
 0x175   :  { %v179_v27 = vpop.f32.mrf.mxu3 }
 0x177   :  { %v204_v28 = vpop.f32.mrf.mxu0 }
 0x178   :  { %v205_v30 = vadd.f32 %v204_v28, %v179_v27 }
 0x17a   :  { %v237_v31 = vadd.f32 %v231_v29, %v205_v30 }
 0x17c   :  { %v239_v32 = vsel %vm140_vm2, %v237_v31, 0.0  ;;  %v243_v33 = vmul.f32 %v237_v31, %v237_v31 }
 0x17d   :  { %240 = vadd.xlane.f32.xlu1 %v239_v32  ;;  %v182_v17 = vpop.f32.mrf.mxu3 }
 0x17e   :  { %v244_v34 = vsel %vm140_vm2, %v243_v33, 0.0 }
 0x17f   :  { %245 = vadd.xlane.f32.xlu2 %v244_v34  ;;  %v207_v18 = vpop.f32.mrf.mxu0 }
 0x180   :  { %v208_v19 = vadd.f32 %v207_v18, %v182_v17 }
 0x1e0   :  { %v143_v37 = vpop.xlane.xlu0 %142 }
 0x1e2   :  { %v148_v36 = vpop.xlane.xlu2 %147 }
 0x1f0   :  { %v241_v38 = vpop.xlane.xlu1 %240 }
 0x1f1   :  { %v242_v39 = vadd.f32 %v241_v38, %v143_v37 }
 0x1f2   :  { %v246_v40 = vpop.xlane.xlu2 %245 }
 0x1f3   :  { %v248_v41 = vmul.f32 0.03125, %v242_v39  ;;  %v247_v42 = vadd.f32 %v246_v40, %v148_v36  ;;  %v623_v40 = vmov 3  }
 0x1f5   :  { %v250_v43 = vmul.f32 %v248_v41, %v248_v41  ;;  %v249_v44 = vmul.f32 0.03125, %v247_v42 }
 0x1f7   :  { %v251_v45 = vsub.f32 %v249_v44, %v250_v43 }
 0x1f9   :  { %v252_v46 = vadd.f32 1e-05, %v251_v45 }
 0x1fb   :  { %585 = vrsqrt.f32 %v252_v46  ;;  %vm259_vm4 = vweird.f32 %v252_v46 }
 0x201   :  { %v586_v47 = vpop.eup %585 }
 0x202   :  { %v254_v48 = vmul.f32 %v586_v47, %v252_v46  ;;  %vm260_vm3 = vweird.f32 %v586_v47 }
 0x203   :  { %vm261_vm5 = vmor %vm259_vm4, %vm260_vm3 }
 0x204   :  { %v255_v49 = vmul.f32 %v586_v47, %v254_v48 }
 0x206   :  { %v256_v50 = vmul.f32 0.5, %v255_v49 }
 0x208   :  { %v257_v51 = vsub.f32 1.5, %v256_v50 }
 0x20a   :  { %v258_v53 = vmul.f32 %v586_v47, %v257_v51 }
 0x20c   :  { %v262_v54 = vsel %vm261_vm5, %v586_v47, %v258_v53 }
 0x20d   :  { %v263_v55 = vmul.f32 %v262_v54, %v709_v52 }
 0x20f   :  { %272 = vperm.xlu1 %581, %v263_v55   ;;  %v264_v56 = vmul.f32 %v263_v55, %v248_v41 }
 0x211   :  { %266 = vrot.lane.b32.xlu0 %v264_v56, %s619_s8 }
 0x281   :  { %v273_v60 = vpop.permute.xlu1 %272 }
 0x282   :  { %v275_v61 = vmul.f32 %v273_v60, %v138_v20  ;;  %v377_v62 = vmul.f32 %v273_v60, %v237_v31  ;;  %v234_v20 = vpop.f32.mrf.mxu1 }
 0x283   :  { %v267_v58 = vpop.permute.xlu0 %266  ;;  %v736_v21 = vadd.f32 %v234_v20, %v208_v19 }
 0x284   :  { %v269_v59 = vsub.f32 %v709_v52, %v267_v58 }
 0x286   :  { %278 = vperm.xlu2 %582, %v269_v59  }
 0x28e   :  { %583 = vset.pattern.permute.xlu2 %v623_v40 }
 0x2e0   :  { %v279_v63 = vpop.permute.xlu2 %278 }
 0x2e1   :  { %v281_v0 = vadd.f32 %v279_v63, %v275_v61  ;;  %v378_v1 = vadd.f32 %v377_v62, %v279_v63  ;;  %v624_v62 = vmov 4  }
 0x2e2   :  { %584 = vset.pattern.permute.xlu0 %v624_v62 }
 0x2e3   :  { %vm282_vm6 = vcmp.ge.f32.partialorder %v281_v0, 0.0  ;;  %v283_v2 = vmul.f32 0.01, %v281_v0  ;;  %vm379_vm7 = vcmp.ge.f32.partialorder %v378_v1, 0.0  ;;  %v380_v3 = vmul.f32 0.01, %v378_v1 }
 0x2e5   :  { %v284_v4 = vsel %vm282_vm6, %v281_v0, %v283_v2  ;;  %v381_v5 = vsel %vm379_vm7, %v378_v1, %v380_v3 }
 0x2e6   :  { %286 = vrot.lane.b32.xlu0 %v284_v4, %s621_s3  ;;  %383 = vrot.lane.b32.xlu1 %v381_v5, %s621_s3 }
 0x358   :  { %v287_v6 = vpop.permute.xlu0 %286  ;;  %v384_v7 = vpop.permute.xlu1 %383 }
 0x359   :  { %561 = vmatpush.msk.msrb.mxu3 %vm560_vm9, %v287_v6  ;;  %566 = vmatpush.msk.msra.mxu0 %vm560_vm9, %v384_v7  ;;  %v290_v8 = vsel %vm289_vm8, 0.0, %v287_v6  ;;  %v386_v9 = vsel %vm289_vm8, 0.0, %v384_v7  ;;  %v139_v7 = vadd.f32 %v135_v23, %v702_v26 }
 0x35a   :  { %292 = vrot.lane.b32.xlu0 %v290_v8, %s616_s20  ;;  %341 = vrot.lane.b32.xlu1 %v290_v8, %s622_s9 }
 0x35b   :  { %388 = vrot.lane.b32.xlu2 %v386_v9, %s616_s20  ;;  %562 = vmatmul.msk.f32.vlgmr.msrb.gmra.mxu3 %vm289_vm8, %v27_v10  ;;  %s626_s20 = smov 128  }
 0x35c   :  { %567 = vmatmul.msk.f32.vlgmr.msra.gmra.mxu0 %vm289_vm8, %v27_v10 }
 0x362   :  { %431 = vrot.lane.b32.xlu0 %v386_v9, %s622_s9 }
 0x3b5   :  { %v389_v11 = vpop.permute.xlu2 %388 }
 0x3b6   :  { %406 = vmatpush.msra.mxu3 %v389_v11 }
 0x3b7   :  { %564 = vmatmul.msk.f32.vlgmr.msra.gmra.mxu3 %vm289_vm8, %v538_v12 }
 0x3cc   :  { %v293_v13 = vpop.permute.xlu0 %292  ;;  %v342_v14 = vpop.permute.xlu1 %341 }
 0x3cd   :  { %313 = vmatpush.msrb.mxu2 %v293_v13 }
 0x3ce   :  { %559 = vmatmul.msk.f32.vlgmr.msrb.gmra.mxu2 %vm289_vm8, %v538_v12 }
 0x3cf   :  { %362 = vmatpush.msra.mxu2 %v342_v14 }
 0x3d4   :  { %v432_v16 = vpop.permute.xlu0 %431 }
 0x3d5   :  { %449 = vmatpush.msra.mxu1 %v432_v16 }
 0x3d6   :  { %563 = vmatmul.msk.f32.vlgmr.msra.gmra.mxu2 %vm289_vm8, %v539_v15  ;;  %568 = vmatmul.msk.f32.vlgmr.msra.gmra.mxu1 %vm289_vm8, %v539_v15 }
 0x3d9   :  { %v428_v25 = vpop.f32.mrf.mxu0 }
 0x3de   :  { %v338_v22 = vpop.f32.mrf.mxu3 }
 0x43a   :  { %v408_v24 = vpop.f32.mrf.mxu3 }
 0x43b   :  { %v429_v27 = vadd.f32 %v428_v25, %v408_v24 }
 0x451   :  { %v315_v28 = vpop.f32.mrf.mxu2 }
 0x452   :  { %v339_v32 = vadd.f32 %v338_v22, %v315_v28 }
 0x453   :  { %v451_v29 = vpop.f32.mrf.mxu1 }
 0x454   :  { %v454_v30 = vadd.f32 %v451_v29, %v429_v27 }
 0x456   :  { %v455_v31 = vsel %vm140_vm2, %v454_v30, 0.0  ;;  %v459_v38 = vmul.f32 %v454_v30, %v454_v30 }
 0x457   :  { %456 = vadd.xlane.f32.xlu1 %v455_v31 }
 0x458   :  { %v460_v39 = vsel %vm140_vm2, %v459_v38, 0.0 }
 0x459   :  { %v364_v33 = vpop.f32.mrf.mxu2 }
 0x45a   :  { %v367_v34 = vadd.f32 %v364_v33, %v339_v32 }
 0x45c   :  { %v368_v35 = vsel %vm140_vm2, %v367_v34, 0.0  ;;  %v372_v36 = vmul.f32 %v367_v34, %v367_v34 }
 0x45d   :  { %369 = vadd.xlane.f32.xlu2 %v368_v35 }
 0x45e   :  { %v373_v37 = vsel %vm140_vm2, %v372_v36, 0.0 }
 0x45f   :  { %374 = vadd.xlane.f32.xlu0 %v373_v37 }
 0x465   :  { %461 = vadd.xlane.f32.xlu2 %v460_v39 }
 0x473   :  { %487 = vrot.lane.b32.xlu0 %v709_v52, %s615_s17 }
 0x4ca   :  { %v457_v42 = vpop.xlane.xlu1 %456 }
 0x4d0   :  { %v370_v41 = vpop.xlane.xlu2 %369 }
 0x4d1   :  { %v458_v43 = vadd.f32 %v457_v42, %v370_v41 }
 0x4d2   :  { %v375_v45 = vpop.xlane.xlu0 %374 }
 0x4d3   :  { %v464_v44 = vmul.f32 0.03125, %v458_v43 }
 0x4d5   :  { %v466_v48 = vmul.f32 %v464_v44, %v464_v44 }
 0x4d8   :  { %v462_v46 = vpop.xlane.xlu2 %461 }
 0x4d9   :  { %v463_v47 = vadd.f32 %v462_v46, %v375_v45 }
 0x4db   :  { %v465_v49 = vmul.f32 0.03125, %v463_v47 }
 0x4dd   :  { %v467_v50 = vsub.f32 %v465_v49, %v466_v48 }
 0x4df   :  { %v468_v51 = vadd.f32 1e-05, %v467_v50 }
 0x4e1   :  { %587 = vrsqrt.f32 %v468_v51  ;;  %vm475_vm11 = vweird.f32 %v468_v51 }
 0x4e5   :  { %v488_v0 = vpop.permute.xlu0 %487 }
 0x4e7   :  { %v588_v53 = vpop.eup %587 }
 0x4e8   :  { %v470_v54 = vmul.f32 %v588_v53, %v468_v51  ;;  %vm476_vm10 = vweird.f32 %v588_v53 }
 0x4e9   :  { %vm477_vm12 = vmor %vm475_vm11, %vm476_vm10 }
 0x4ea   :  { %v471_v55 = vmul.f32 %v588_v53, %v470_v54 }
 0x4ec   :  { %v472_v56 = vmul.f32 0.5, %v471_v55 }
 0x4ee   :  { %v473_v57 = vsub.f32 1.5, %v472_v56 }
 0x4f0   :  { %v474_v58 = vmul.f32 %v588_v53, %v473_v57 }
 0x4f2   :  { %v478_v59 = vsel %vm477_vm12, %v588_v53, %v474_v58 }
 0x4f3   :  { %v479_v60 = vmul.f32 %v478_v59, %v709_v52 }
 0x4f5   :  { %493 = vperm.xlu2 %583, %v479_v60   ;;  %v480_v61 = vmul.f32 %v479_v60, %v464_v44 }
 0x4f7   :  { %482 = vrot.lane.b32.xlu1 %v480_v61, %s619_s8 }
 0x54f   :  { %v494_v3 = vpop.permute.xlu2 %493 }
 0x550   :  { %v496_v4 = vmul.f32 %v494_v3, %v367_v34  ;;  %v508_v5 = vmul.f32 %v494_v3, %v454_v30 }
 0x569   :  { %v483_v63 = vpop.permute.xlu1 %482 }
 0x56a   :  { %v485_v1 = vsub.f32 %v709_v52, %v483_v63 }
 0x56c   :  { %v490_v2 = vadd.f32 %v488_v0, %v485_v1 }
 0x56e   :  { %499 = vperm.xlu0 %584, %v490_v2  }
 0x5e0   :  { %v500_v6 = vpop.permute.xlu0 %499 }
 0x5e1   :  { %v502_v8 = vadd.f32 %v500_v6, %v496_v4  ;;  %v509_v9 = vadd.f32 %v508_v5, %v500_v6 }
 0x5e3   :  { %v503_v10 = vadd.f32 %v502_v8, %v139_v7  ;;  %v510_v11 = vadd.f32 %v509_v9, %v736_v21 }
 0x5e5   :  { %vm504_vm13 = vcmp.ge.f32.partialorder %v503_v10, 0.0  ;;  %v505_v52 = vmul.f32 0.01, %v503_v10  ;;  %vm511_vm14 = vcmp.ge.f32.partialorder %v510_v11, 0.0  ;;  %v512_v12 = vmul.f32 0.01, %v510_v11 }
 0x5e7   :  { %v506_v13 = vsel %vm504_vm13, %v503_v10, %v505_v52  ;;  %v513_v14 = vsel %vm511_vm14, %v510_v11, %v512_v12 }
 0x5e8   :  { %507 = vst.msk [vmem:[#allocation2] sm:$0xff] %vm140_vm2, %v506_v13 }
 0x5e9   :  { %515 = vst.msk [vmem:[#allocation2 + $0x8] sm:$0xff] %vm140_vm2, %v513_v14 }
 0x5ea   :  { %528 = dma.vmem_to_hbm [thread:$0]  %s521_s16, 256, %s523_s19, [#allocation3], %s626_s20, %s626_s20, %s621_s3  }
 0x5eb   :  { %613 = dma.done.wait [#allocation3], 256  }
 0x5ec   :  { %614 = vsyncadd [#allocation3], 4294967040 }
 0x5ed   :  { %533 = vsyncpa [#allocation3], 1 }

</bundles_post_ra>
